<compile_context>
chip_gen: v7x
topology: tpu7x:2x2x1
jax: 0.10.0
libtpu: 0.0.40
codegen_flags: <defaults>
</compile_context>

<pallas_src>
import math

import jax
import jax.numpy as jnp
from jax.experimental import pallas as pl
from jax.experimental.pallas import tpu as pltpu

_LANE = 128


def _round_up(x, m):
    return ((x + m - 1) // m) * m


def _cdiv(a, b):
    return (a + b - 1) // b


def mlp_kernel(x_ref, w1t_ref, w2t_ref, o_ref, h_ref, acc_ref):
    """One (batch-tile, hidden-tile) grid step of relu(x @ w1.T) @ w2.T."""
    k = pl.program_id(1)

    @pl.when(k == 0)
    def _():
        acc_ref[...] = jnp.zeros_like(acc_ref)

    # First linear slab (no bias): MXU matmul with f32 accumulation, ReLU on
    # the VPU.  The hidden slab is stored in the compute dtype (not f32) to
    # halve the scratch footprint and VMEM traffic before the second matmul.
    h_ref[...] = jnp.maximum(
        jnp.dot(x_ref[...].astype(w1t_ref.dtype), w1t_ref[...],
                preferred_element_type=jnp.float32),
        0.0).astype(h_ref.dtype)

    # Second linear slab, accumulated in f32 across hidden tiles.
    acc_ref[...] += jnp.dot(h_ref[...], w2t_ref[...],
                            preferred_element_type=jnp.float32)

    @pl.when(k == pl.num_programs(1) - 1)
    def _():
        o_ref[...] = acc_ref[...].astype(o_ref.dtype)


def prepare_mlp_params(w1, w2, compute_dtype=jnp.bfloat16):
    """One-time weight prep (call OUTSIDE the per-step path).

    Takes PyTorch nn.Linear layout weights w1: [H, D_in], w2: [D_out, H] and
    returns pre-transposed, zero-padded (and optionally down-cast) weights
    w1t: [D_in_p, H_p], w2t: [H_p, D_out_p] ready for the kernel, so no
    transpose / pad HBM traffic is paid on each forward call.  Padded rows /
    columns are zero, so they contribute nothing through ReLU or the second
    matmul.  Default compute dtype is bf16 (the MXU fast path on v6e/v7x);
    f32 accumulation is always kept in-kernel, but the bf16 path will not
    bit-match an fp32 PyTorch MLP.
    """
    hidden, d_in = w1.shape
    d_out = w2.shape[0]
    d_in_p = _round_up(d_in, _LANE)
    h_p = _round_up(hidden, _LANE)
    d_out_p = _round_up(d_out, _LANE)

    w1t = jnp.zeros((d_in_p, h_p), dtype=compute_dtype)
    w1t = w1t.at[:d_in, :hidden].set(w1.T.astype(compute_dtype))
    w2t = jnp.zeros((h_p, d_out_p), dtype=compute_dtype)
    w2t = w2t.at[:hidden, :d_out].set(w2.T.astype(compute_dtype))
    return w1t, w2t


def _make_spec(shape, index_map, buffer_count=None):
    """BlockSpec helper; pins buffer count when supported (resident weights)."""
    if buffer_count is None:
        return pl.BlockSpec(shape, index_map)
    try:
        return pl.BlockSpec(shape, index_map,
                            pipeline_mode=pl.Buffered(buffer_count))
    except Exception:  # older jax without pipeline_mode / Buffered
        return pl.BlockSpec(shape, index_map)


def mlp_forward(x, w1t, w2t, d_out, *, tb_max=512, th_max=None):
    """x: [B, D_in]; w1t/w2t: padded transposed weights from prepare_mlp_params."""
    B, d_in = x.shape
    d_in_p, h_p = w1t.shape
    d_out_p = w2t.shape[1]
    compute_dtype = w1t.dtype
    out_dtype = x.dtype
    c_item = jnp.dtype(compute_dtype).itemsize
    x_item = max(jnp.dtype(x.dtype).itemsize, c_item)   # conservative
    o_item = jnp.dtype(out_dtype).itemsize

    # ---- batch tiling: sublane-aligned, minimal padding, even tile count ----
    sub = (8 * 4) // c_item            # 8 rows for f32 tiles, 16 for bf16
    b_sub = _round_up(B, sub)
    n_tiles = max(1, _cdiv(b_sub, tb_max))
    if n_tiles > 1 and n_tiles % 2 == 1:
        n_tiles += 1                   # even count -> balanced v7x megacore split
    tb = _round_up(_cdiv(b_sub, n_tiles), sub)
    b_pad = n_tiles * tb

    # ---- VMEM budget from the actual chip generation ----
    try:
        vmem_cap = int(pltpu.get_tpu_info().vmem_capacity_bytes)
    except Exception:
        vmem_cap = 64 * 1024 * 1024    # conservative fallback (v7x per-TC)
    vmem_limit = max(32 * 1024 * 1024, vmem_cap - 8 * 1024 * 1024)
    budget = int(vmem_limit * 0.9)     # headroom for Mosaic internal scratch

    def vmem_needed(th_, n_h_, tb_):
        wbuf = 1 if n_h_ == 1 else 2                   # Buffered(1) when resident
        return (2 * tb_ * d_in_p * x_item              # double-buffered x tiles
                + 2 * tb_ * d_out_p * o_item           # double-buffered out tiles
                + wbuf * d_in_p * th_ * c_item         # w1 slab(s)
                + wbuf * th_ * d_out_p * c_item        # w2 slab(s)
                + tb_ * th_ * c_item                   # hidden slab scratch
                + tb_ * d_out_p * 4)                   # f32 accumulator scratch

    # ---- hidden-dim tiling: resident weights when they fit, streamed else ----
    m = h_p // _LANE
    th_cands = [d * _LANE for d in range(m, 0, -1) if m % d == 0]
    if th_max is not None:
        th_cands = [c for c in th_cands if c <= max(th_max, _LANE)] or [_LANE]

    while True:
        th = None
        for cand in th_cands:
            if vmem_needed(cand, h_p // cand, tb) <= budget:
                th = cand
                break
        if th is not None or tb <= sub:
            th = th if th is not None else th_cands[-1]
            break
        # Shrink the batch tile and retry (very large D_in/D_out case).
        tb = max(sub, _round_up(tb // 2, sub))
        n_tiles = _cdiv(b_sub, tb)
        if n_tiles > 1 and n_tiles % 2 == 1:
            n_tiles += 1
        b_pad = n_tiles * tb
    n_h = h_p // th
    w_buf = 1 if n_h == 1 else None    # pin resident weights to a single buffer

    # ---- x fast path: skip the wrapper-side pad/cast when already aligned ----
    needs_pad = (b_pad != B) or (d_in_p != d_in)
    if needs_pad:
        x_p = jnp.zeros((b_pad, d_in_p), dtype=compute_dtype)
        x_p = x_p.at[:B, :d_in].set(x.astype(compute_dtype))
    else:
        x_p = x                        # any dtype cast happens in-kernel

    flops = 2 * b_pad * d_in_p * h_p + 2 * b_pad * h_p * d_out_p
    w_bytes = (d_in_p * h_p + h_p * d_out_p) * c_item
    bytes_accessed = (b_pad * d_in_p * jnp.dtype(x_p.dtype).itemsize
                      + w_bytes * (1 if n_h == 1 else n_tiles)
                      + b_pad * d_out_p * o_item)

    out_p = pl.pallas_call(
        mlp_kernel,
        out_shape=jax.ShapeDtypeStruct((b_pad, d_out_p), out_dtype),
        grid_spec=pltpu.PrefetchScalarGridSpec(
            num_scalar_prefetch=0,
            grid=(n_tiles, n_h),
            in_specs=[
                # x tiled over batch, constant across the hidden axis.
                pl.BlockSpec((tb, d_in_p), lambda i, k: (i, 0)),
                # Weight slabs: resident (single-buffered) when n_h == 1,
                # streamed (double-buffered) otherwise.
                _make_spec((d_in_p, th), lambda i, k: (0, k), w_buf),
                _make_spec((th, d_out_p), lambda i, k: (k, 0), w_buf),
            ],
            # Lane-dense output (last dim a multiple of 128) -> unmasked vst.
            out_specs=pl.BlockSpec((tb, d_out_p), lambda i, k: (i, 0)),
            scratch_shapes=[
                pltpu.VMEM((tb, th), compute_dtype),      # hidden slab
                pltpu.VMEM((tb, d_out_p), jnp.float32),   # f32 accumulator
            ],
        ),
        compiler_params=pltpu.CompilerParams(
            # Batch tiles independent (megacore-shardable); hidden axis is a
            # reduction into the resident accumulator block.
            dimension_semantics=("parallel", "arbitrary"),
            vmem_limit_bytes=int(vmem_limit),
        ),
        cost_estimate=pl.CostEstimate(
            flops=int(flops), transcendentals=0,
            bytes_accessed=int(bytes_accessed)),
    )(x_p, w1t, w2t)

    if b_pad != B or d_out_p != d_out:
        return out_p[:B, :d_out]
    return out_p


def init_linear_weight(key, out_features, in_features, dtype=jnp.float32):
    # Deterministic init mimicking torch nn.Linear.reset_parameters():
    # kaiming_uniform_(a=sqrt(5)) -> U(-1/sqrt(fan_in), 1/sqrt(fan_in)).
    bound = 1.0 / math.sqrt(in_features)
    return jax.random.uniform(key, (out_features, in_features),
                              minval=-bound, maxval=bound, dtype=dtype)


if __name__ == "__main__":
    key = jax.random.PRNGKey(0)
    k_x, k_w1, k_w2, k_x2, k_w3, k_w4 = jax.random.split(key, 6)

    # ---- small shapes matching the module spec ----
    batch, input_dim, hidden_dim, output_dim = 8, 16, 32, 8
    x = jax.random.normal(k_x, (batch, input_dim), dtype=jnp.float32)
    w1 = init_linear_weight(k_w1, hidden_dim, input_dim)   # [H, D_in]
    w2 = init_linear_weight(k_w2, output_dim, hidden_dim)  # [D_out, H]

    # Reference in plain JAX (same math as the PyTorch forward).
    ref = jnp.maximum(x @ w1.T, 0.0) @ w2.T

    # f32 compute path (tight tolerance).
    w1t_f32, w2t_f32 = prepare_mlp_params(w1, w2, compute_dtype=jnp.float32)
    out_f32 = jax.block_until_ready(mlp_forward(x, w1t_f32, w2t_f32, output_dim))
    assert out_f32.shape == (batch, output_dim)
    assert jnp.allclose(out_f32, ref, atol=1e-5, rtol=1e-5)

    # bf16 MXU path (default; f32 accumulation in-kernel) -> looser tolerance.
    w1t_b16, w2t_b16 = prepare_mlp_params(w1, w2)
    out_b16 = jax.block_until_ready(mlp_forward(x, w1t_b16, w2t_b16, output_dim))
    assert out_b16.shape == (batch, output_dim)
    assert jnp.allclose(out_b16, ref, atol=3e-2, rtol=3e-2)

    # ---- exercise multi batch-tile grid + hidden-dim reduction axis ----
    b2, d2_in, d2_h, d2_out = 40, 16, 256, 24
    x2 = jax.random.normal(k_x2, (b2, d2_in), dtype=jnp.float32)
    w3 = init_linear_weight(k_w3, d2_h, d2_in)
    w4 = init_linear_weight(k_w4, d2_out, d2_h)
    ref2 = jnp.maximum(x2 @ w3.T, 0.0) @ w4.T
    w3t, w4t = prepare_mlp_params(w3, w4, compute_dtype=jnp.float32)
    out2 = jax.block_until_ready(
        mlp_forward(x2, w3t, w4t, d2_out, tb_max=16, th_max=128))
    assert out2.shape == (b2, d2_out)
    assert jnp.allclose(out2, ref2, atol=1e-4, rtol=1e-4)

    print("KERNEL_OK")
</pallas_src>

<mosaic_0001>
module attributes {stable_mosaic.version = 11 : i64} {
  func.func @mlp_kernel(%arg0: i32, %arg1: i32, %arg2: memref<8x128xf32, #tpu.memory_space<vmem>>, %arg3: memref<128x128xf32, #tpu.memory_space<vmem>>, %arg4: memref<128x128xf32, #tpu.memory_space<vmem>>, %arg5: memref<8x128xf32, #tpu.memory_space<vmem>>, %arg6: memref<8x128xf32, #tpu.memory_space<vmem>>, %arg7: memref<8x128xf32, #tpu.memory_space<vmem>>) attributes {dimension_semantics = [#tpu.dimension_semantics<parallel>, #tpu.dimension_semantics<arbitrary>], iteration_bounds = array<i64: 1, 1>, scalar_prefetch = 0 : i64, scratch_operands = 2 : i64, tpu.core_type = #tpu.core_type<tc>, window_params = [{transform_indices = @transform_0, window_bounds = array<i64: 8, 128>}, {pipeline_mode = #tpu.pipeline_mode<synchronous>, transform_indices = @transform_1, window_bounds = array<i64: 128, 128>}, {pipeline_mode = #tpu.pipeline_mode<synchronous>, transform_indices = @transform_2, window_bounds = array<i64: 128, 128>}, {transform_indices = @transform_3, window_bounds = array<i64: 8, 128>}]} {
    %c0_i32 = arith.constant 0 : i32
    %0 = arith.cmpi eq, %arg1, %c0_i32 : i32
    %1 = arith.extui %0 : i1 to i32
    %c0_i32_0 = arith.constant 0 : i32
    %2 = arith.cmpi ne, %1, %c0_i32_0 : i32
    scf.if %2 {
      %cst_18 = arith.constant 0.000000e+00 : f32
      %18 = vector.broadcast %cst_18 : f32 to vector<8x128xf32>
      %c0_19 = arith.constant 0 : index
      %c0_20 = arith.constant 0 : index
      %19 = vector.load %arg7[%c0_19, %c0_20] : memref<8x128xf32, #tpu.memory_space<vmem>>, vector<8x128xf32>
      tpu.vector_store %arg7[%c0_19, %c0_20], %18 {strides = array<i32>} : memref<8x128xf32, #tpu.memory_space<vmem>>, vector<8x128xf32>,
    } else {
    }
    %c0 = arith.constant 0 : index
    %c0_1 = arith.constant 0 : index
    %3 = vector.load %arg2[%c0, %c0_1] : memref<8x128xf32, #tpu.memory_space<vmem>>, vector<8x128xf32>
    %c0_2 = arith.constant 0 : index
    %c0_3 = arith.constant 0 : index
    %4 = vector.load %arg3[%c0_2, %c0_3] : memref<128x128xf32, #tpu.memory_space<vmem>>, vector<128x128xf32>
    %cst = arith.constant dense<0.000000e+00> : vector<8x128xf32>
    %5 = tpu.matmul %3, %4, %cst {dimension_numbers = #tpu.dot_dimension_numbers<[1], [0], [0], [1], [0, 0, 1, 1], [], []>} : vector<8x128xf32>, vector<128x128xf32>, vector<8x128xf32> -> vector<8x128xf32>
    %cst_4 = arith.constant 0.000000e+00 : f32
    %6 = vector.broadcast %cst_4 : f32 to vector<8x128xf32>
    %7 = arith.maximumf %5, %6 : vector<8x128xf32>
    %c0_5 = arith.constant 0 : index
    %c0_6 = arith.constant 0 : index
    %8 = vector.load %arg6[%c0_5, %c0_6] : memref<8x128xf32, #tpu.memory_space<vmem>>, vector<8x128xf32>
    tpu.vector_store %arg6[%c0_5, %c0_6], %7 {strides = array<i32>} : memref<8x128xf32, #tpu.memory_space<vmem>>, vector<8x128xf32>,
    %c0_7 = arith.constant 0 : index
    %c0_8 = arith.constant 0 : index
    %9 = vector.load %arg7[%c0_7, %c0_8] : memref<8x128xf32, #tpu.memory_space<vmem>>, vector<8x128xf32>
    %c0_9 = arith.constant 0 : index
    %c0_10 = arith.constant 0 : index
    %10 = vector.load %arg6[%c0_9, %c0_10] : memref<8x128xf32, #tpu.memory_space<vmem>>, vector<8x128xf32>
    %c0_11 = arith.constant 0 : index
    %c0_12 = arith.constant 0 : index
    %11 = vector.load %arg4[%c0_11, %c0_12] : memref<128x128xf32, #tpu.memory_space<vmem>>, vector<128x128xf32>
    %cst_13 = arith.constant dense<0.000000e+00> : vector<8x128xf32>
    %12 = tpu.matmul %10, %11, %cst_13 {dimension_numbers = #tpu.dot_dimension_numbers<[1], [0], [0], [1], [0, 0, 1, 1], [], []>} : vector<8x128xf32>, vector<128x128xf32>, vector<8x128xf32> -> vector<8x128xf32>
    %13 = arith.addf %9, %12 : vector<8x128xf32>
    %c0_14 = arith.constant 0 : index
    %c0_15 = arith.constant 0 : index
    %14 = vector.load %arg7[%c0_14, %c0_15] : memref<8x128xf32, #tpu.memory_space<vmem>>, vector<8x128xf32>
    tpu.vector_store %arg7[%c0_14, %c0_15], %13 {strides = array<i32>} : memref<8x128xf32, #tpu.memory_space<vmem>>, vector<8x128xf32>,
    %c0_i32_16 = arith.constant 0 : i32
    %15 = arith.cmpi eq, %arg1, %c0_i32_16 : i32
    %16 = arith.extui %15 : i1 to i32
    %c0_i32_17 = arith.constant 0 : i32
    %17 = arith.cmpi ne, %16, %c0_i32_17 : i32
    scf.if %17 {
      %c0_18 = arith.constant 0 : index
      %c0_19 = arith.constant 0 : index
      %18 = vector.load %arg7[%c0_18, %c0_19] : memref<8x128xf32, #tpu.memory_space<vmem>>, vector<8x128xf32>
      %c0_20 = arith.constant 0 : index
      %c0_21 = arith.constant 0 : index
      %19 = vector.load %arg5[%c0_20, %c0_21] : memref<8x128xf32, #tpu.memory_space<vmem>>, vector<8x128xf32>
      tpu.vector_store %arg5[%c0_20, %c0_21], %18 {strides = array<i32>} : memref<8x128xf32, #tpu.memory_space<vmem>>, vector<8x128xf32>,
    } else {
    }
    return
  }
  func.func @transform_0(%arg0: i32, %arg1: i32) -> (i32, i32) {
    %c0_i32 = arith.constant 0 : i32
    %c0_i32_0 = arith.constant 0 : i32
    return %arg0, %c0_i32 : i32, i32
  }
  func.func @transform_1(%arg0: i32, %arg1: i32) -> (i32, i32) {
    %c0_i32 = arith.constant 0 : i32
    %c0_i32_0 = arith.constant 0 : i32
    return %c0_i32, %arg1 : i32, i32
  }
  func.func @transform_2(%arg0: i32, %arg1: i32) -> (i32, i32) {
    %c0_i32 = arith.constant 0 : i32
    %c0_i32_0 = arith.constant 0 : i32
    return %arg1, %c0_i32 : i32, i32
  }
  func.func @transform_3(%arg0: i32, %arg1: i32) -> (i32, i32) {
    %c0_i32 = arith.constant 0 : i32
    %c0_i32_0 = arith.constant 0 : i32
    return %arg0, %c0_i32 : i32, i32
  }
}

</mosaic_0001>

<bundles_post_ra>
// kernel: tpu_custom_call.1
= control target key start
LH: loop header
LB: loop body
LE: loop exit
PB: predicated region body
PF: predicated region fallthrough
CT: control target
= control target key end

     0   :  { %8 = vsyncpa [#allocation5], 0  ;;  %s613_s0 = inlined_call_operand.hbm [shape: f32[8,128], index: 0, kind: input, shape index: {}]   ;;  %s614_s1 = inlined_call_operand.hbm [shape: f32[128,128], index: 1, kind: input, shape index: {}]   ;;  %s615_s2 = inlined_call_operand.hbm [shape: f32[128,128], index: 2, kind: input, shape index: {}]   ;;  %s616_s3 = inlined_call_operand.hbm [shape: f32[8,128], index: 3, kind: output, shape index: {}]  }
   0x1   :  { %9 = vsyncpa [#allocation8], 0 }
   0x2   :  { %10 = vsyncpa [#allocation6], 0  ;;  %s514_s12 = smov [#allocation7]   ;;  %s420_s16 = scalar_lea.hbm %s614_s1, 2048 }
   0x3   :  { %s26_s13 = sshll.u32 %s514_s12, 4  ;;  %p421_p0 = scmp.ne.s32.totalorder %s614_s1, %s420_s16  ;;  %s27_s13 = int_to_ptr.vmem [resolvable:$true] %s26_s13 }
   0x4   :  { %p424_p1 = scmp.lt.u32.totalorder %s420_s16, %s614_s1 }
   0x6   :  { %p426_p2 = pnand %p424_p1, %p421_p0 }
   0x8   :  { %429 = shalt.err (!%p426_p2)
}
   0x9   :  { %s430_s21 = scalar_lea.vmem %s27_s13, 2048  ;;  %p435_p4 = scmp.lt.s32.totalorder %s27_s13, %s27_s13 }
   0xa   :  { %p431_p3 = scmp.ne.s32.totalorder %s27_s13, %s430_s21  ;;  %p436_p5 = scmp.lt.s32.totalorder %s430_s21, %s430_s21 }
   0xc   :  { %p437_p6 = por %p436_p5, %p435_p4 }
   0xe   :  { %p438_p7 = pnand %p437_p6, %p431_p3 }
  0x10   :  { %441 = shalt.err (!%p438_p7)
}
  0x11   :  { %s515_s22 = smov 128   ;;  %s516_s23 = smov 8  }
  0x12   :  { %32 = dma.hbm_to_vmem [thread:$0]  %s614_s1, 2048, %s27_s13, [#allocation8], %s515_s22, %s515_s22, %s516_s23  }
  0x13   :  { %s517_s26 = smov [#allocation4]   ;;  %s518_s28 = smov [#allocation9]  }
  0x14   :  { %s17_s27 = sshll.u32 %s517_s26, 4  ;;  %s38_s29 = sshll.u32 %s518_s28, 4  ;;  %s18_s27 = int_to_ptr.vmem [resolvable:$true] %s17_s27  ;;  %s39_s29 = int_to_ptr.vmem [resolvable:$true] %s38_s29 }
  0x15   :  { %s442_s5 = scalar_lea.hbm %s613_s0, 128 }
  0x16   :  { %p443_p8 = scmp.ne.s32.totalorder %s613_s0, %s442_s5  ;;  %p446_p9 = scmp.lt.u32.totalorder %s442_s5, %s613_s0 }
  0x18   :  { %p448_p10 = pnand %p446_p9, %p443_p8 }
  0x1a   :  { %451 = shalt.err (!%p448_p10)
}
  0x1b   :  { %s452_s1 = scalar_lea.vmem %s18_s27, 128  ;;  %p457_p12 = scmp.lt.s32.totalorder %s18_s27, %s18_s27 }
  0x1c   :  { %p453_p11 = scmp.ne.s32.totalorder %s18_s27, %s452_s1  ;;  %p458_p13 = scmp.lt.s32.totalorder %s452_s1, %s452_s1 }
  0x1e   :  { %p459_p0 = por %p458_p13, %p457_p12 }
  0x20   :  { %p460_p1 = pnand %p459_p0, %p453_p11 }
  0x22   :  { %463 = shalt.err (!%p460_p1)
}
  0x23   :  { %20 = dma.hbm_to_vmem [thread:$0]  %s613_s0, 128, %s18_s27, [#allocation5]  }
  0x24   :  { %s464_s14 = scalar_lea.hbm %s615_s2, 2048 }
  0x25   :  { %p465_p2 = scmp.ne.s32.totalorder %s615_s2, %s464_s14  ;;  %p468_p3 = scmp.lt.u32.totalorder %s464_s14, %s615_s2 }
  0x27   :  { %p470_p4 = pnand %p468_p3, %p465_p2 }
  0x29   :  { %473 = shalt.err (!%p470_p4)
}
  0x2a   :  { %s474_s19 = scalar_lea.vmem %s39_s29, 2048  ;;  %p479_p6 = scmp.lt.s32.totalorder %s39_s29, %s39_s29 }
  0x2b   :  { %p475_p5 = scmp.ne.s32.totalorder %s39_s29, %s474_s19  ;;  %p480_p7 = scmp.lt.s32.totalorder %s474_s19, %s474_s19 }
  0x2d   :  { %p481_p8 = por %p480_p7, %p479_p6 }
  0x2f   :  { %p482_p9 = pnand %p481_p8, %p475_p5 }
  0x31   :  { %485 = shalt.err (!%p482_p9)
}
  0x32   :  { %44 = dma.hbm_to_vmem [thread:$0]  %s615_s2, 2048, %s39_s29, [#allocation8], %s515_s22, %s515_s22, %s516_s23  }
  0x33   :  { %508 = dma.done.wait [#allocation5], 128  }
  0x34   :  { %509 = vsyncadd [#allocation5], 4294967168 }
  0x35   :  { %510 = dma.done.wait [#allocation8], 4096  }
  0x36   :  { %511 = vsyncadd [#allocation8], 4294963200  ;;  %v519_v0 = vmov 0.0|0.0   ;;  %vm520_vm0 = vmmov 0   ;;  %v521_v1 = vmov 0.0   ;;  %v60_v2 = vld [vmem:[#allocation7] sm:$0xff] }
  0x37   :  { %363 = vmatprep.subr.bf16.mxu0 %v519_v0  ;;  %325 = vmatprep.mubr.msk.f32.mxu0 %vm520_vm0, %v521_v1  ;;  %v61_v3 = vld [vmem:[#allocation7 + $0x8] sm:$0xff]  ;;  %v62_v4 = vld [vmem:[#allocation7 + $0x10] sm:$0xff]  ;;  %v63_v6 = vld [vmem:[#allocation7 + $0x18] sm:$0xff]  ;;  %s522_s2 = smov [#allocation10]  }
  0x38   :  { %387 = vmatprep.subr.bf16.mxu1 %v519_v0  ;;  %360 = vmatprep.mubr.msk.f32.mxu1 %vm520_vm0, %v521_v1  ;;  %v364_v5 = vpack.c.bf16 %v61_v3, %v60_v2  ;;  %v367_v7 = vpack.c.bf16 %v63_v6, %v62_v4  ;;  %v64_v8 = vld [vmem:[#allocation7 + $0x20] sm:$0xff]  ;;  %v65_v9 = vld [vmem:[#allocation7 + $0x28] sm:$0xff]  ;;  %v152_v12 = vld [vmem:[#allocation9 + $0x10] sm:$0xff]  ;;  %s249_s21 = sshll.u32 %s522_s2, 4  ;;  %s250_s21 = int_to_ptr.vmem [resolvable:$true] %s249_s21 }
  0x39   :  { %v150_v10 = vld [vmem:[#allocation9] sm:$0xff]  ;;  %v151_v11 = vld [vmem:[#allocation9 + $0x8] sm:$0xff]  ;;  %v153_v13 = vld [vmem:[#allocation9 + $0x18] sm:$0xff]  ;;  %v370_v14 = vpack.c.bf16 %v65_v9, %v64_v8  ;;  %s486_s22 = scalar_lea.vmem %s250_s21, 128  ;;  %p491_p11 = scmp.lt.s32.totalorder %s250_s21, %s250_s21 }
  0x3a   :  { %365 = vmatpush3.bf16.msra.mxu0 %v364_v5  ;;  %v388_v15 = vpack.c.bf16 %v151_v11, %v150_v10  ;;  %v66_v16 = vld [vmem:[#allocation7 + $0x30] sm:$0xff]  ;;  %v67_v17 = vld [vmem:[#allocation7 + $0x38] sm:$0xff]  ;;  %v391_v18 = vpack.c.bf16 %v153_v13, %v152_v12  ;;  %v154_v19 = vld [vmem:[#allocation9 + $0x20] sm:$0xff]  ;;  %p487_p10 = scmp.ne.s32.totalorder %s250_s21, %s486_s22  ;;  %p492_p12 = scmp.lt.s32.totalorder %s486_s22, %s486_s22 }
  0x3b   :  { %366 = vmatprep.subr.bf16.mxu0 %v519_v0  ;;  %v155_v20 = vld [vmem:[#allocation9 + $0x28] sm:$0xff]  ;;  %v373_v21 = vpack.c.bf16 %v67_v17, %v66_v16  ;;  %v68_v22 = vld [vmem:[#allocation7 + $0x40] sm:$0xff]  ;;  %v156_v25 = vld [vmem:[#allocation9 + $0x30] sm:$0xff] }
  0x3c   :  { %389 = vmatpush3.bf16.msra.mxu1 %v388_v15  ;;  %v69_v23 = vld [vmem:[#allocation7 + $0x48] sm:$0xff]  ;;  %v394_v24 = vpack.c.bf16 %v155_v20, %v154_v19  ;;  %v157_v26 = vld [vmem:[#allocation9 + $0x38] sm:$0xff]  ;;  %v70_v28 = vld [vmem:[#allocation7 + $0x50] sm:$0xff]  ;;  %p493_p13 = por %p492_p12, %p491_p11 }
  0x3d   :  { %390 = vmatprep.subr.bf16.mxu1 %v519_v0  ;;  %v376_v27 = vpack.c.bf16 %v69_v23, %v68_v22  ;;  %v71_v29 = vld [vmem:[#allocation7 + $0x58] sm:$0xff]  ;;  %v397_v30 = vpack.c.bf16 %v157_v26, %v156_v25  ;;  %v158_v31 = vld [vmem:[#allocation9 + $0x40] sm:$0xff]  ;;  %v159_v32 = vld [vmem:[#allocation9 + $0x48] sm:$0xff] }
  0x3e   :  { %368 = vmatpush3.bf16.msra.mxu0 %v367_v7  ;;  %v379_v33 = vpack.c.bf16 %v71_v29, %v70_v28  ;;  %v72_v34 = vld [vmem:[#allocation7 + $0x60] sm:$0xff]  ;;  %v73_v35 = vld [vmem:[#allocation7 + $0x68] sm:$0xff]  ;;  %v400_v36 = vpack.c.bf16 %v159_v32, %v158_v31  ;;  %v160_v37 = vld [vmem:[#allocation9 + $0x50] sm:$0xff]  ;;  %p494_p0 = pnand %p493_p13, %p487_p10 }
  0x3f   :  { %369 = vmatprep.subr.bf16.mxu0 %v519_v0  ;;  %v161_v38 = vld [vmem:[#allocation9 + $0x58] sm:$0xff]  ;;  %v382_v39 = vpack.c.bf16 %v73_v35, %v72_v34  ;;  %v74_v40 = vld [vmem:[#allocation7 + $0x70] sm:$0xff]  ;;  %v162_v43 = vld [vmem:[#allocation9 + $0x60] sm:$0xff] }
  0x40   :  { %392 = vmatpush3.bf16.msra.mxu1 %v391_v18  ;;  %v75_v41 = vld [vmem:[#allocation7 + $0x78] sm:$0xff]  ;;  %v403_v42 = vpack.c.bf16 %v161_v38, %v160_v37  ;;  %v163_v44 = vld [vmem:[#allocation9 + $0x68] sm:$0xff]  ;;  %v164_v48 = vld [vmem:[#allocation9 + $0x70] sm:$0xff] }
  0x41   :  { %393 = vmatprep.subr.bf16.mxu1 %v519_v0  ;;  %v385_v45 = vpack.c.bf16 %v75_v41, %v74_v40  ;;  %v406_v46 = vpack.c.bf16 %v163_v44, %v162_v43  ;;  %v59_v47 = vld [vmem:[#allocation4] sm:$0xff] }
  0x42   :  { %371 = vmatpush3.bf16.msra.mxu0 %v370_v14  ;;  %v165_v49 = vld [vmem:[#allocation9 + $0x78] sm:$0xff] }
  0x43   :  { %372 = vmatprep.subr.bf16.mxu0 %v519_v0  ;;  %v409_v50 = vpack.c.bf16 %v165_v49, %v164_v48 }
  0x44   :  { %395 = vmatpush3.bf16.msra.mxu1 %v394_v24 }
  0x45   :  { %396 = vmatprep.subr.bf16.mxu1 %v519_v0 }
  0x46   :  { %374 = vmatpush3.bf16.msra.mxu0 %v373_v21 }
  0x47   :  { %375 = vmatprep.subr.bf16.mxu0 %v519_v0 }
  0x48   :  { %398 = vmatpush3.bf16.msra.mxu1 %v397_v30 }
  0x49   :  { %399 = vmatprep.subr.bf16.mxu1 %v519_v0 }
  0x4a   :  { %377 = vmatpush3.bf16.msra.mxu0 %v376_v27 }
  0x4b   :  { %378 = vmatprep.subr.bf16.mxu0 %v519_v0 }
  0x4c   :  { %401 = vmatpush3.bf16.msra.mxu1 %v400_v36 }
  0x4d   :  { %402 = vmatprep.subr.bf16.mxu1 %v519_v0 }
  0x4e   :  { %380 = vmatpush3.bf16.msra.mxu0 %v379_v33 }
  0x4f   :  { %381 = vmatprep.subr.bf16.mxu0 %v519_v0 }
  0x50   :  { %404 = vmatpush3.bf16.msra.mxu1 %v403_v42 }
  0x51   :  { %405 = vmatprep.subr.bf16.mxu1 %v519_v0 }
  0x52   :  { %383 = vmatpush3.bf16.msra.mxu0 %v382_v39 }
  0x53   :  { %384 = vmatprep.subr.bf16.mxu0 %v519_v0 }
  0x54   :  { %407 = vmatpush3.bf16.msra.mxu1 %v406_v46 }
  0x55   :  { %408 = vmatprep.subr.bf16.mxu1 %v519_v0 }
  0x56   :  { %386 = vmatpush3.bf16.msra.mxu0 %v385_v45 }
  0x58   :  { %410 = vmatpush3.bf16.msra.mxu1 %v409_v50 }
  0x59   :  { %326 = vmatmul.mubr.f32.vlgmr.msra.gmra.mrb[0].mxu0 %v59_v47 }
 0x12c   :  { %v142_v51 = vpop.f32.mrb[0].mxu0 }
 0x12d   :  { %v146_v52 = vmax.f32 %v142_v51, 0.0  ;;  %v327_v53 = vpop.f32.mrb[1].mxu0 }
 0x12f   :  { %361 = vmatmul.mubr.f32.vlgmr.msra.gmra.mrb[0].mxu1 %v146_v52 }
 0x202   :  { %v232_v54 = vpop.f32.mrb[0].mxu1 }
 0x203   :  { %242 = vst [vmem:[#allocation10] sm:$0xff] %v232_v54  ;;  %v362_v55 = vpop.f32.mrb[1].mxu1 }
 0x204   :  { %497 = shalt.err (!%p494_p0)
}
 0x205   :  { %s498_s25 = scalar_lea.hbm %s616_s3, 128 }
 0x206   :  { %p499_p1 = scmp.ne.s32.totalorder %s616_s3, %s498_s25  ;;  %p502_p2 = scmp.lt.u32.totalorder %s498_s25, %s616_s3 }
 0x208   :  { %p504_p3 = pnand %p502_p2, %p499_p1 }
 0x20a   :  { %507 = shalt.err (!%p504_p3)
}
 0x20b   :  { %252 = dma.vmem_to_hbm [thread:$0]  %s250_s21, 128, %s616_s3, [#allocation6]  }
 0x20c   :  { %512 = dma.done.wait [#allocation6], 128  }
 0x20d   :  { %513 = vsyncadd [#allocation6], 4294967168 }
 0x20e   :  { %256 = vsyncpa [#allocation5], 1 }
 0x20f   :  { %257 = vsyncpa [#allocation8], 1 }
 0x210   :  { %258 = vsyncpa [#allocation6], 1 }

</bundles_post_ra>
